<compile_context>
chip_gen: v7x
topology: tpu7x:2x2x1
jax: 0.10.0
libtpu: 0.0.40
codegen_flags: <defaults>
</compile_context>

<pallas_src>
import functools

import jax
import jax.numpy as jnp
from jax import lax
from jax.experimental import pallas as pl
from jax.experimental.pallas import tpu as pltpu


def _round_up(x, m):
    return (x + m - 1) // m * m


def _usable_vmem_bytes():
    """Physical VMEM capacity minus headroom (falls back to v7x's 64 MiB)."""
    try:
        cap = pltpu.get_tpu_info().vmem_capacity_bytes
    except Exception:  # pragma: no cover - query unavailable on this backend
        cap = 64 << 20
    return max(int(cap) - (8 << 20), 16 << 20)


# ---------------------------------------------------------------------------
# Resident-table kernel (n comparable to or larger than V, table fits VMEM)
# ---------------------------------------------------------------------------
def _resident_gather_kernel(tile_n, v_max, ids_ref, w_ref, out_ref):
    """Gather `tile_n` rows of the VMEM-resident table into one dense tile.

    ids_ref : SMEM (n_pad,) int32      -- scalar-prefetched lookup ids
    w_ref   : VMEM (V_pad, D_pad)      -- whole padded embedding table (resident)
    out_ref : VMEM (tile_n, D_pad)     -- lane/sublane-dense output tile
    """
    base = pl.program_id(0) * tile_n

    def group(g, carry):
        gbase = base + g * 8
        # Batch the scalar work (SMEM reads + in-kernel clamp) ahead of the
        # vector copies so the 2 scalar slots don't serialize the gather.
        rows = [jnp.clip(ids_ref[gbase + j], 0, v_max) for j in range(8)]
        # 8 single-row VMEM loads stitched into one (8, D_pad) block => a single
        # unmasked dense store per group instead of 8 masked (1, D_pad) stores.
        block = jnp.concatenate(
            [w_ref[pl.ds(rows[j], 1), :] for j in range(8)], axis=0)
        off = pl.multiple_of(g * 8, 8)
        out_ref[pl.ds(off, 8), :] = block
        return carry

    lax.fori_loop(0, tile_n // 8, group, 0, unroll=2)


def _resident_gather(weight, ids_flat, V, D, D_pad, tile_n):
    n = ids_flat.shape[0]
    V_pad = _round_up(V, 8)
    n_pad = _round_up(n, tile_n)

    # Pad once on the host (a real model would store the table pre-padded).
    w_pad = jnp.pad(weight, ((0, V_pad - V), (0, D_pad - D)))
    ids_pad = jnp.pad(ids_flat, (0, n_pad - n))  # pad ids gather row 0; sliced off

    itemsize = jnp.dtype(weight.dtype).itemsize
    table_bytes = V_pad * D_pad * itemsize
    out_tile_bytes = tile_n * D_pad * itemsize

    def call(single_buffer_table):
        n_table_bufs = 1 if single_buffer_table else 2
        vmem_limit = int(min(
            n_table_bufs * table_bytes + 4 * out_tile_bytes + (8 << 20),
            _usable_vmem_bytes()))
        if single_buffer_table:
            # Constant block index => the table is DMA'd once; single-buffer it
            # so it is only counted once in VMEM.
            w_spec = pl.BlockSpec((V_pad, D_pad), lambda i, ids: (0, 0),
                                  pipeline_mode=pl.Buffered(1))
        else:
            w_spec = pl.BlockSpec((V_pad, D_pad), lambda i, ids: (0, 0))
        return pl.pallas_call(
            functools.partial(_resident_gather_kernel, tile_n, V - 1),
            out_shape=jax.ShapeDtypeStruct((n_pad, D_pad), weight.dtype),
            grid_spec=pltpu.PrefetchScalarGridSpec(
                num_scalar_prefetch=1,           # ids land in SMEM before the grid
                grid=(n_pad // tile_n,),         # one grid step per TILE of ids
                in_specs=[w_spec],
                out_specs=pl.BlockSpec((tile_n, D_pad), lambda i, ids: (i, 0)),
            ),
            compiler_params=pltpu.CompilerParams(
                dimension_semantics=("parallel",),   # independent tiles; v7x 2-TC
                vmem_limit_bytes=vmem_limit,
            ),
        )(ids_pad, w_pad)

    try:
        out_flat = call(single_buffer_table=True)
    except Exception:
        # pl.Buffered(1) (single-buffered resident table) unsupported on this
        # jax version -> fall back to the default double-buffered table.
        out_flat = call(single_buffer_table=False)
    return out_flat[:n, :D]


# ---------------------------------------------------------------------------
# Row-gather kernel (n << V, or table too large to keep resident in VMEM)
# ---------------------------------------------------------------------------
def _row_gather_kernel(ids_ref, w_row_ref, out_row_ref):
    # ids_ref drives the input index_map; the body is a plain row copy.
    del ids_ref
    out_row_ref[...] = w_row_ref[...]


def _row_gather(weight, ids_flat, V, D, D_pad):
    n = ids_flat.shape[0]
    # Tiny id stream on this path: host clamp is negligible (and keeps the
    # data-dependent index_map in range).
    ids_c = jnp.clip(ids_flat, 0, V - 1)
    # Reshape to (V, 1, D_pad) so the per-row block's last two dims equal the
    # full array dims (clean (8,128) tiling constraint satisfaction).
    w3 = jnp.pad(weight, ((0, 0), (0, D_pad - D))).reshape(V, 1, D_pad)

    out = pl.pallas_call(
        _row_gather_kernel,
        out_shape=jax.ShapeDtypeStruct((n, 1, D_pad), weight.dtype),
        grid_spec=pltpu.PrefetchScalarGridSpec(
            num_scalar_prefetch=1,
            grid=(n,),
            # Only the needed rows are DMA'd (double-buffered by the pipeline).
            in_specs=[pl.BlockSpec((1, 1, D_pad), lambda i, ids: (ids[i], 0, 0))],
            out_specs=pl.BlockSpec((1, 1, D_pad), lambda i, ids: (i, 0, 0)),
        ),
        compiler_params=pltpu.CompilerParams(
            dimension_semantics=("arbitrary",),
        ),
    )(ids_c, w3)
    return out[:, 0, :D]


# ---------------------------------------------------------------------------
# Public wrapper (PyTorch Embedding.forward equivalent: weight[ids])
# ---------------------------------------------------------------------------
def embedding_lookup(weight, ids, *, max_tile_n=1024):
    V, D = weight.shape
    ids_flat = ids.reshape(-1).astype(jnp.int32)
    n = ids_flat.shape[0]

    D_pad = _round_up(D, 128)                       # lane-dense output rows
    itemsize = jnp.dtype(weight.dtype).itemsize
    table_bytes = _round_up(V, 8) * D_pad * itemsize
    rows_bytes = n * D_pad * itemsize

    # Tile of ids: multiple of 8 (sublane-dense), >= ~4 grid steps for small n
    # (v7x 2-TC sharding / DMA overlap), capped for large n.
    tile_n = min(max_tile_n, max(8, _round_up(pl.cdiv(n, 4), 8)))
    out_tile_bytes = tile_n * D_pad * itemsize

    resident_fits = (table_bytes + 4 * out_tile_bytes + (8 << 20)
                     <= _usable_vmem_bytes())
    small_n = 4 * rows_bytes < table_bytes          # roughly n < V/4

    if small_n or not resident_fits:
        out = _row_gather(weight, ids_flat, V, D, D_pad)
    else:
        out = _resident_gather(weight, ids_flat, V, D, D_pad, tile_n)
    return out.reshape(ids.shape + (D,))


if __name__ == "__main__":
    # Deterministic synthetic parameters mirroring the module:
    #   weight = randn(vocab_size, wordvec_size); forward(id) = weight[id]
    vocab_size = 1001      # stand-in for int(max(corpus) + 1) with corpus_size=1001
    wordvec_size = 100

    key = jax.random.PRNGKey(0)
    k_w, k_id_small, k_id_big = jax.random.split(key, 3)

    weight = jax.random.normal(k_w, (vocab_size, wordvec_size), dtype=jnp.float32)

    # Small id batch (module-scale: batch=2, seq=8) -> exercises the row-gather path.
    ids_small = jax.random.randint(k_id_small, (2, 8), 0, vocab_size, dtype=jnp.int32)
    out_small = jax.block_until_ready(embedding_lookup(weight, ids_small))
    assert out_small.shape == (2, 8, wordvec_size), out_small.shape
    assert out_small.dtype == jnp.float32
    assert jnp.array_equal(out_small, weight[ids_small]), "row-gather path mismatch"

    # Larger id batch -> exercises the resident-table path (n >= ~V/4).
    ids_big = jax.random.randint(k_id_big, (4, 256), 0, vocab_size, dtype=jnp.int32)
    out_big = jax.block_until_ready(embedding_lookup(weight, ids_big))
    assert out_big.shape == (4, 256, wordvec_size), out_big.shape
    assert jnp.array_equal(out_big, weight[ids_big]), "resident path mismatch"

    print("KERNEL_OK")
</pallas_src>

<mosaic_0001>
module attributes {stable_mosaic.version = 11 : i64} {
  func.func @_row_gather_kernel(%arg0: i32, %arg1: memref<16xi32, #tpu.memory_space<smem>>, %arg2: memref<1x1x128xf32, #tpu.memory_space<vmem>>, %arg3: memref<1x1x128xf32, #tpu.memory_space<vmem>>) attributes {dimension_semantics = [#tpu.dimension_semantics<arbitrary>], iteration_bounds = array<i64: 16>, scalar_prefetch = 1 : i64, scratch_operands = 0 : i64, tpu.core_type = #tpu.core_type<tc>, window_params = [{transform_indices = @transform_0, window_bounds = array<i64: 1, 1, 128>}, {transform_indices = @transform_1, window_bounds = array<i64: 1, 1, 128>}]} {
    %c0 = arith.constant 0 : index
    %c0_0 = arith.constant 0 : index
    %c0_1 = arith.constant 0 : index
    %0 = vector.load %arg2[%c0, %c0_0, %c0_1] : memref<1x1x128xf32, #tpu.memory_space<vmem>>, vector<1x1x128xf32>
    %c0_2 = arith.constant 0 : index
    %c0_3 = arith.constant 0 : index
    %c0_4 = arith.constant 0 : index
    %1 = vector.load %arg3[%c0_2, %c0_3, %c0_4] : memref<1x1x128xf32, #tpu.memory_space<vmem>>, vector<1x1x128xf32>
    tpu.vector_store %arg3[%c0_2, %c0_3, %c0_4], %0 {strides = array<i32>} : memref<1x1x128xf32, #tpu.memory_space<vmem>>, vector<1x1x128xf32>,
    return
  }
  func.func @transform_0(%arg0: i32, %arg1: memref<16xi32, #tpu.memory_space<smem>>) -> (i32, i32, i32) {
    %0 = arith.index_cast %arg0 : i32 to index
    %1 = memref.load %arg1[%0] : memref<16xi32, #tpu.memory_space<smem>>
    %c0_i32 = arith.constant 0 : i32
    %c0_i32_0 = arith.constant 0 : i32
    %c0_i32_1 = arith.constant 0 : i32
    return %1, %c0_i32, %c0_i32_0 : i32, i32, i32
  }
  func.func @transform_1(%arg0: i32, %arg1: memref<16xi32, #tpu.memory_space<smem>>) -> (i32, i32, i32) {
    %c0_i32 = arith.constant 0 : i32
    %c0_i32_0 = arith.constant 0 : i32
    %c0_i32_1 = arith.constant 0 : i32
    return %arg0, %c0_i32, %c0_i32_0 : i32, i32, i32
  }
}

</mosaic_0001>

<bundles_post_ra>
// kernel: tpu_custom_call.1
= control target key start
LH: loop header
LB: loop body
LE: loop exit
PB: predicated region body
PF: predicated region fallthrough
CT: control target
= control target key end

     0   :  { %s654_s0 = inlined_call_operand.hbm [shape: s32[16], index: 0, kind: input, shape index: {}]   ;;  %s655_s1 = inlined_call_operand.hbm [shape: f32[1001,1,128], index: 1, kind: input, shape index: {}]   ;;  %s656_s2 = inlined_call_operand.hbm [shape: f32[16,1,128], index: 2, kind: output, shape index: {}]  }
   0x1   :  { %s298_s11 = scalar_lea.hbm %s654_s0, 16 }
   0x2   :  { %p299_p0 = scmp.ne.s32.totalorder %s654_s0, %s298_s11  ;;  %p302_p1 = scmp.lt.u32.totalorder %s298_s11, %s654_s0 }
   0x4   :  { %p304_p2 = pnand %p302_p1, %p299_p0 }
   0x6   :  { %307 = shalt.err (!%p304_p2)  }
   0x7   :  { %s432_s16 = smov [#allocation3]  }
   0x8   :  { %8 = dma.hbm_to_smem %s654_s0, 16, %s432_s16, [#allocation2] }
   0x9   :  { %394 = dma.done.wait [#allocation2], 16 }
   0xa   :  { %395 = vsyncadd [#allocation2], 4294967280 }
   0xb   :  { %10 = sfence }
   0xc   :  { %11 = vsyncpa [#allocation5], 0 }
   0xd   :  { %13 = vsyncpa [#allocation5 + $0x1], 0 }
   0xe   :  { %14 = vsyncpa [#allocation6], 0 }
   0xf   :  { %16 = vsyncpa [#allocation6 + $0x1], 0  ;;  %s462_s19 = smov 0   ;;  %s464_s20 = smov 0  }
  0x10   :  { %s466_s21 = smov 0   ;;  %s468_s22 = smov 0  }
  0x11   :  { %s470_s23 = smov 0   ;;  %s472_s24 = smov 0  }
  0x12   :  { %s474_s0 = smov 0  }
  0x13 LB: > { %s496_s25 = sadd.s32 4294967295, %s430_s0   ;;  %s215_s26 = sadd.s32 4294967294, %s430_s0   ;;  %s430_s0 = sphi %s474_s0, %s674_s0   ;;  %s426_s24 = sphi %s472_s24, %s673_s24   ;;  %s422_s23 = sphi %s470_s23, %s672_s23   ;;  %s418_s22 = sphi %s468_s22, %s671_s22   ;;  %s414_s21 = sphi %s466_s21, %s670_s21   ;;  %s410_s20 = sphi %s464_s20, %s669_s20   ;;  %s406_s19 = sphi %s462_s19, %s668_s19  }
  0x14   : > { %s500_s27 = sadd.s32 1, %s430_s0   ;;  %s26_s28 = sld [smem:[#allocation3 + %s430_s0]] }
  0x15   : > { %s27_s29 = sld [smem:[#allocation3 + %s500_s27]]  ;;  %s31_s30 = sadd.s32 1, %s426_s24 }
  0x16   : > { %p38_p3 = scmp.ne.s32.totalorder %s426_s24, %s422_s23  ;;  %p39_p4 = scmp.eq.s32.totalorder %s430_s0, 0 }
  0x17   : > { %p44_p5 = scmp.ne.s32.totalorder %s422_s23, %s418_s22  ;;  %p45_p6 = scmp.eq.s32.totalorder %s496_s25, 0 }
  0x18   : > { %p510_p7 = por %p39_p4, %p38_p3  ;;  %s54_s4 = ssub.s32 %s430_s0, %s500_s27 }
  0x19   : > { %p516_p8 = por %p45_p6, %p44_p5  ;;  %p55_p9 = scmp.eq.s32.totalorder %s54_s4, 0 }
  0x1a   : > { %s57_s6 = sadd.s32 1, %s414_s21  ;;  %p67_p10 = scmp.ne.s32.totalorder %s414_s21, %s410_s20 }
  0x1b   : > { %s660_s5 = scalar_select %p516_p8, 1, 0 }
  0x1c   : > { %s28_s7 = ssub.s32 %s26_s28, %s27_s29  ;;  %p68_p11 = scmp.eq.s32.totalorder %s496_s25, 15 }
  0x1d   : > { %p29_p12 = scmp.eq.s32.totalorder %s28_s7, 0  ;;  %p73_p13 = scmp.ne.s32.totalorder %s410_s20, %s406_s19 }
  0x1e   : > { %s527_s8 = scalar_select %p55_p9, %s414_s21, %s57_s6  }
  0x1f   : > { %s530_s9 = scalar_select %p29_p12, %s426_s24, %s31_s30  }
  0x20   : > { %p532_p0 = por %p68_p11, %p67_p10  ;;  %p74_p1 = scmp.eq.s32.totalorder %s215_s26, 15 }
  0x21   : > { %p239_p3 = scmp.lt.s32.totalorder %s430_s0, 16  ;;  %s94_s12 = sand.u32 1, %s426_s24  }
  0x22   : > { %s661_s10 = scalar_select %p532_p0, 1, 0 }
  0x23   : > { %p536_p2 = por %p74_p1, %p73_p13  ;;  %p549_p4 = pnand %p239_p3, %p510_p7 }
  0x24   : > { %s223_s13 = scalar_select %p510_p7, [#allocation3], [#allocation8] }
  0x25   : > { %s662_s11 = scalar_select %p536_p2, 1, 0 }
  0x26   : > { %s224_s14 = scalar_select %p510_p7, %s430_s0, 0 }
  0x27   : > { %s676_s13 = smov (!%p239_p3, %s223_s13), [#allocation9]  ;;  %p219_p5 = scmp.ge.s32.totalorder %s430_s0, 1 }
  0x28   : > { %s678_s14 = smov (!%p239_p3, %s224_s14), 0  ;;  %s97_s17 = scalar_lea.vmem [#allocation4], %s94_s12 }
  0x29   : > { %s98_s16 = sld [smem:[%s676_s13 + %s678_s14]]  ;;  %s105_s18 = sshll.u32 %s97_s17, 4  ;;  %s559_s18 = int_to_ptr.vmem [resolvable:$true] %s105_s18 }
  0x2a   : > { %p110_p6 = scmp.lt.s32.totalorder %s430_s0, 17  ;;  %s95_s3 = scalar_lea.sflag [#allocation5], %s94_s12 }
  0x2b   : > { %p310_p10 = pneg %p549_p4  ;;  %s313_s13 = scalar_lea.hbm %s655_s1, 16016 }
  0x2c   : > { %p555_p9 = pnand %p219_p5, %p110_p6 }
  0x2f   : > { %s218_s26 = sshll.u32 %s98_s16, 4 }
  0x30   : > { %s564_s30 = scalar_lea.hbm %s655_s1, %s218_s26 }
  0x31   : > { %s308_s4 = scalar_lea.hbm %s564_s30, 16  ;;  %p314_p13 = scmp.lt.u32.totalorder %s564_s30, %s655_s1 }
  0x32   : > { %p309_p7 = scmp.ne.s32.totalorder %s564_s30, %s308_s4  ;;  %p315_p1 = scmp.lt.u32.totalorder %s313_s13, %s308_s4 }
  0x33   : > { %p317_p5 = scmp.lt.u32.totalorder %s308_s4, %s564_s30 }
  0x34   : > { %p311_p11 = pnand %p310_p10, %p309_p7  ;;  %p316_p3 = por %p315_p1, %p314_p13 }
  0x36   : > { %p312_p12 = pneg %p311_p11  ;;  %p318_p6 = por %p317_p5, %p316_p3 }
  0x38   : > { %p319_p2 = pnand %p318_p6, %p312_p12 }
  0x3a   : > { %322 = shalt.err (!%p319_p2)
}
  0x3b   : > { %s323_s12 = scalar_lea.vmem %s559_s18, 16  ;;  %s433_s17 = smov [#allocation4]  }
  0x3c   : > { %p324_p7 = scmp.ne.s32.totalorder %s559_s18, %s323_s12  ;;  %s328_s26 = sshll.u32 %s433_s17, 4  ;;  %s329_s26 = int_to_ptr.vmem [resolvable:$false] %s328_s26 }
  0x3d   : > { %s330_s28 = scalar_lea.vmem %s329_s26, 32  ;;  %p331_p8 = scmp.lt.s32.totalorder %s559_s18, %s329_s26 }
  0x3e   : > { %p326_p11 = pnand %p324_p7, %p310_p10  ;;  %p332_p13 = scmp.lt.s32.totalorder %s330_s28, %s323_s12 }
  0x40   : > { %p327_p0 = pneg %p326_p11  ;;  %p333_p1 = por %p332_p13, %p331_p8 }
  0x42   : > { %p334_p3 = pnand %p333_p1, %p327_p0 }
  0x44   : > { %337 = shalt.err (!%p334_p3)
}
  0x45   : > { %234 = dma.hbm_to_vmem [thread:$0]  (!%p549_p4), %s564_s30, 16, %s559_s18, %s95_s3  }
  0x46   : > { %114 = sbr.rel (%p555_p9) target bundleno = 104 (0x68), region = 24  ;;  %s116_s29 = sand.u32 (!%p555_p9), 1, %s422_s23  }
  0x47   : > { %s117_s4 = scalar_lea.sflag (!%p555_p9), [#allocation5], %s116_s29  ;;  %s119_s6 = scalar_lea.vmem (!%p555_p9), [#allocation4], %s116_s29 }
  0x48   : > { %p665_p2 = scmp.ne.s32.totalorder (!%p555_p9), %s660_s5, 0 }
  0x4d   : > { %397 = dma.done.wait (%p665_p2), %s117_s4, 16  }
  0x4e   : > { %399 = vsyncadd (%p665_p2), %s117_s4, 4294967280  ;;  %s134_s15 = sand.u32 1, %s410_s20   ;;  %s220_s18 = sshll.u32 %s496_s25, 4  ;;  %v137_v0 = vld [vmem:[%s119_s6] sm:$0x1] }
  0x4f   : > { %s135_s7 = scalar_lea.vmem [#allocation7], %s134_s15  ;;  %s605_s3 = scalar_lea.hbm %s656_s2, %s220_s18 }
  0x50   : > { %s152_s13 = sshll.u32 %s135_s7, 4  ;;  %138 = vst [vmem:[%s135_s7] sm:$0x1] %v137_v0  ;;  %s140_s5 = scalar_lea.sflag [#allocation6], %s134_s15  ;;  %s600_s13 = int_to_ptr.vmem [resolvable:$true] %s152_s13 }
  0x51   : > { %s338_s14 = scalar_lea.vmem %s600_s13, 16  ;;  %p666_p0 = scmp.ne.s32.totalorder %s661_s10, 0 }
  0x52   : > { %p339_p8 = scmp.ne.s32.totalorder %s600_s13, %s338_s14  ;;  %s434_s16 = smov [#allocation7]  }
  0x53   : > { %s342_s25 = sshll.u32 %s434_s16, 4  ;;  %s343_s25 = int_to_ptr.vmem [resolvable:$false] %s342_s25 }
  0x54   : > { %p340_p4 = pnand %p339_p8, %p666_p0  ;;  %s344_s12 = scalar_lea.vmem %s343_s25, 32 }
  0x55   : > { %p345_p10 = scmp.lt.s32.totalorder %s600_s13, %s343_s25  ;;  %p346_p12 = scmp.lt.s32.totalorder %s344_s12, %s338_s14 }
  0x56   : > { %p341_p9 = pneg %p340_p4 }
  0x57   : > { %p347_p5 = por %p346_p12, %p345_p10 }
  0x59   : > { %p348_p6 = pnand %p347_p5, %p341_p9 }
  0x5b   : > { %351 = shalt.err (!%p348_p6)
}
  0x5c   : > { %s352_s17 = scalar_lea.hbm %s605_s3, 16  ;;  %s356_s29 = scalar_lea.hbm %s656_s2, 256 }
  0x5d   : > { %p353_p7 = scmp.ne.s32.totalorder %s605_s3, %s352_s17  ;;  %p357_p1 = scmp.lt.u32.totalorder %s605_s3, %s656_s2 }
  0x5e   : > { %p358_p3 = scmp.lt.u32.totalorder %s356_s29, %s352_s17  ;;  %p360_p8 = scmp.lt.u32.totalorder %s352_s17, %s605_s3 }
  0x5f   : > { %p354_p11 = pnand %p353_p7, %p666_p0 }
  0x60   : > { %p359_p2 = por %p358_p3, %p357_p1 }
  0x61   : > { %p355_p13 = pneg %p354_p11 }
  0x62   : > { %p361_p4 = por %p360_p8, %p359_p2 }
  0x64   : > { %p362_p9 = pnand %p361_p4, %p355_p13 }
  0x66   : > { %365 = shalt.err (!%p362_p9)
}
  0x67   : > { %227 = dma.vmem_to_hbm [thread:$0]  (%p666_p0), %s600_s13, 16, %s605_s3, %s140_s5  }
  0x68 PF: > { %p240_p10 = scmp.ge.s32.totalorder %s430_s0, 2  ;;  %s164_s15 = sand.u32 1, %s406_s19  }
  0x69   : > { %p667_p12 = scmp.ne.s32.totalorder %s662_s11, 0  ;;  %s165_s7 = scalar_lea.sflag [#allocation6], %s164_s15 }
  0x6b   : > { %p236_p5 = pnand %p240_p10, %p667_p12 }
  0x6d   : > { %401 = dma.done.wait (!%p236_p5), %s165_s7, 16  }
  0x6e   : > { %403 = vsyncadd (!%p236_p5), %s165_s7, 4294967280  ;;  %p19_p0 = scmp.ge.s32.totalorder %s500_s27, 18   ;;  %s668_s19 = smov %s410_s20 }
  0x6f   : > { %s669_s20 = smov %s414_s21  ;;  %s670_s21 = smov %s527_s8 }
  0x70   : > { %s671_s22 = smov %s422_s23  ;;  %s672_s23 = smov %s426_s24 }
  0x71   : > { %s673_s24 = smov %s530_s9  ;;  %s674_s0 = smov %s500_s27 }
  0x72   :  { %21 = sbr.rel (!%p19_p0) target bundleno = 19 (0x13), region = 69 }
  0x79   :  { %169 = vsyncpa [#allocation5], 1 }
  0x7a   :  { %171 = vsyncpa [#allocation5 + $0x1], 1 }
  0x7b   :  { %172 = vsyncpa [#allocation6], 1 }
  0x7c   :  { %174 = vsyncpa [#allocation6 + $0x1], 1 }

</bundles_post_ra>
